<compile_context>
chip_gen: v6e
topology: v6e:2x2x1
jax: 0.10.0
libtpu: 0.0.40
codegen_flags: <defaults>
</compile_context>

<pallas_src>
import math

import jax
import jax.numpy as jnp
from jax.experimental import pallas as pl
from jax.experimental.pallas import tpu as pltpu

D_MODEL = 32
MAX_LEN = 5000


def make_positional_encoding_table(d_model, max_len=MAX_LEN):
    """Same buffer as PositionalEncoding.__init__ (shape (max_len, d_model), f32)."""
    position = jnp.arange(max_len, dtype=jnp.float32)[:, None]                  # (L, 1)
    div_term = jnp.exp(jnp.arange(0, d_model, 2, dtype=jnp.float32)
                       * (-math.log(10000.0) / d_model))                        # (d/2,)
    angles = position * div_term                                                # (L, d/2)
    pe = jnp.zeros((max_len, d_model), dtype=jnp.float32)
    pe = pe.at[:, 0::2].set(jnp.sin(angles))
    pe = pe.at[:, 1::2].set(jnp.cos(angles))
    return pe


# ------------------------- Pallas kernel -------------------------

def _pe_add_kernel(x_ref, pe_ref, o_ref):
    # x_ref / o_ref: (1, 1, S*D) tile for one batch element (lane-dense last dim).
    # pe_ref:        (1, 1, S*D), same block for every grid step (resident).
    o_ref[...] = x_ref[...] + pe_ref[...]


# ------------------------- wrapper -------------------------

@jax.jit
def positional_encoding_forward(x, pe):
    """x: (B, S, D); pe: (max_len, D) buffer. Returns x + pe[:S] (dropout = identity)."""
    B, S, D = x.shape
    flat = S * D

    x_flat = x.reshape(B, 1, flat)
    pe_flat = pe[:S].astype(x.dtype).reshape(1, 1, flat)

    out = pl.pallas_call(
        _pe_add_kernel,
        out_shape=jax.ShapeDtypeStruct((B, 1, flat), x.dtype),
        grid=(B,),
        in_specs=[
            pl.BlockSpec((1, 1, flat), lambda b: (b, 0, 0)),   # per-batch activation tile
            pl.BlockSpec((1, 1, flat), lambda b: (0, 0, 0)),   # shared PE slice, resident
        ],
        out_specs=pl.BlockSpec((1, 1, flat), lambda b: (b, 0, 0)),
        compiler_params=pltpu.CompilerParams(dimension_semantics=("parallel",)),
    )(x_flat, pe_flat)

    return out.reshape(B, S, D)


# ------------------------- main -------------------------

if __name__ == "__main__":
    key = jax.random.PRNGKey(0)
    B, S = 2, 8

    x = jax.random.normal(key, (B, S, D_MODEL), jnp.float32)
    pe = make_positional_encoding_table(D_MODEL, MAX_LEN)

    out = positional_encoding_forward(x, pe)
    out = jax.block_until_ready(out)

    # Pure-JAX reference (matches PyTorch forward in eval mode).
    ref = x + pe[None, :S, :].astype(x.dtype)

    assert out.shape == (B, S, D_MODEL)
    assert bool(jnp.all(jnp.isfinite(out)))
    max_err = float(jnp.max(jnp.abs(out - ref)))
    assert max_err < 1e-6, f"mismatch vs reference: {max_err}"

    print("KERNEL_OK")
</pallas_src>

<mosaic_0001>
module attributes {stable_mosaic.version = 11 : i64} {
  func.func @_pe_add_kernel(%arg0: i32, %arg1: memref<1x1x256xf32, #tpu.memory_space<vmem>>, %arg2: memref<1x1x256xf32, #tpu.memory_space<vmem>>, %arg3: memref<1x1x256xf32, #tpu.memory_space<vmem>>) attributes {dimension_semantics = [#tpu.dimension_semantics<parallel>], iteration_bounds = array<i64: 2>, scalar_prefetch = 0 : i64, scratch_operands = 0 : i64, tpu.core_type = #tpu.core_type<tc>, window_params = [{transform_indices = @transform_0, window_bounds = array<i64: 1, 1, 256>}, {pipeline_mode = #tpu.pipeline_mode<synchronous>, transform_indices = @transform_1, window_bounds = array<i64: 1, 1, 256>}, {transform_indices = @transform_2, window_bounds = array<i64: 1, 1, 256>}]} {
    %c0 = arith.constant 0 : index
    %c0_0 = arith.constant 0 : index
    %c0_1 = arith.constant 0 : index
    %0 = vector.load %arg1[%c0, %c0_0, %c0_1] : memref<1x1x256xf32, #tpu.memory_space<vmem>>, vector<1x1x256xf32>
    %c0_2 = arith.constant 0 : index
    %c0_3 = arith.constant 0 : index
    %c0_4 = arith.constant 0 : index
    %1 = vector.load %arg2[%c0_2, %c0_3, %c0_4] : memref<1x1x256xf32, #tpu.memory_space<vmem>>, vector<1x1x256xf32>
    %2 = arith.addf %0, %1 : vector<1x1x256xf32>
    %c0_5 = arith.constant 0 : index
    %c0_6 = arith.constant 0 : index
    %c0_7 = arith.constant 0 : index
    %3 = vector.load %arg3[%c0_5, %c0_6, %c0_7] : memref<1x1x256xf32, #tpu.memory_space<vmem>>, vector<1x1x256xf32>
    tpu.vector_store %arg3[%c0_5, %c0_6, %c0_7], %2 {strides = array<i32>} : memref<1x1x256xf32, #tpu.memory_space<vmem>>, vector<1x1x256xf32>,
    return
  }
  func.func @transform_0(%arg0: i32) -> (i32, i32, i32) {
    %c0_i32 = arith.constant 0 : i32
    %c0_i32_0 = arith.constant 0 : i32
    %c0_i32_1 = arith.constant 0 : i32
    return %arg0, %c0_i32, %c0_i32_0 : i32, i32, i32
  }
  func.func @transform_1(%arg0: i32) -> (i32, i32, i32) {
    %c0_i32 = arith.constant 0 : i32
    %c0_i32_0 = arith.constant 0 : i32
    %c0_i32_1 = arith.constant 0 : i32
    %c0_i32_2 = arith.constant 0 : i32
    return %c0_i32, %c0_i32_0, %c0_i32_1 : i32, i32, i32
  }
  func.func @transform_2(%arg0: i32) -> (i32, i32, i32) {
    %c0_i32 = arith.constant 0 : i32
    %c0_i32_0 = arith.constant 0 : i32
    %c0_i32_1 = arith.constant 0 : i32
    return %arg0, %c0_i32, %c0_i32_0 : i32, i32, i32
  }
}

</mosaic_0001>

<bundles_post_ra>
// kernel: positional_encoding_forward.1
= control target key start
LH: loop header
LB: loop body
LE: loop exit
PB: predicated region body
PF: predicated region fallthrough
CT: control target
= control target key end

     0   :  { %s221_s9 = smov 0   ;;  %s249_s0 = inlined_call_operand.vmem [shape: f32[2,1,256], index: 0, kind: input, shape index: {}]   ;;  %s250_s1 = inlined_call_operand.vmem [shape: f32[1,1,256], index: 1, kind: input, shape index: {}]   ;;  %s251_s2 = inlined_call_operand.vmem [shape: f32[2,1,256], index: 2, kind: output, shape index: {}]  }
   0x1 LB: > { %s200_s10 = sadd.s32 4294967295, %s223_s9   ;;  %p204_p0 = scmp.ge.s32.totalorder %s223_s9, 1  ;;  %s223_s9 = sphi %s221_s9, %s12_s9  }
   0x2   : > { %p111_p1 = scmp.lt.s32.totalorder %s223_s9, 3 }
   0x4   : > { %p112_p2 = pnand %p204_p0, %p111_p1 }
   0x5   : > { %p131_p3 = scmp.lt.s32.totalorder (!%p112_p2), %s200_s10, 1 }
   0x6   : > { %115 = sbr.rel (%p112_p2) target bundleno = 18 (0x12), region = 28 }
   0xb   : > { %s253_s10 = smov (!%p131_p3, %s200_s10), 1  ;;  %v142_v0 = vlaneseq  ;;  %v140_v1 = vld [vmem:[%s250_s1] sm:$0x3] }
   0xc   : > { %s205_s11 = sshll.u32 %s253_s10, 1 }
   0xd   : > { %s134_s16 = scalar_lea.vmem %s249_s0, %s205_s11  ;;  %s138_s19 = scalar_lea.vmem %s251_s2, %s205_s11  ;;  %vm144_vm0 = vcmp.lt.s32.totalorder %v142_v0, 256 }
   0xe   : > { %v139_v2 = vld [vmem:[%s134_s16] sm:$0x3] }
   0xf   : > { %v141_v3 = vadd.f32 %v140_v1, %v139_v2 }
  0x11   : > { %146 = vst.msk [vmem:[%s138_s19] sm:$0x3] %vm144_vm0, %v141_v3 }
  0x12 PF: > { %s12_s9 = sadd.s32 1, %s223_s9  }
  0x13   : > { %p9_p4 = scmp.ge.s32.totalorder %s12_s9, 4  }
  0x15   :  { %11 = sbr.rel (!%p9_p4) target bundleno = 1 (0x1), region = 58 }

</bundles_post_ra>
